<compile_context>
chip_gen: v5e
topology: v5e:2x2
jax: 0.10.0
libtpu: 0.0.40
codegen_flags: <defaults>
</compile_context>

<pallas_src>
import math

import jax
import jax.numpy as jnp
from jax.experimental import pallas as pl
from jax.experimental.pallas import tpu as pltpu

K_IN = 28 * 28      # 784 real input features (multiple of 8; used unpadded)
H1 = 128            # hidden 1 (already lane-dense)
H2 = 64             # real hidden 2
H2_PAD = 128        # lane-dense hidden 2
N_OUT = 10          # real logits
N_PAD = 128         # lane-dense logits (unmasked vst; sliced off in the wrapper)

MAX_TB = 2048       # batch-tile cap (amortizes per-step overhead, fits VMEM easily)


def _mlp_kernel(x_ref, w1_ref, b1_ref, w2_ref, b2_ref, w3_ref, b3_ref, o_ref):
    # x tile: (TB, 784) f32 read once from HBM, cast to bf16 in-register.  Three MXU
    # matmuls with f32 accumulation; bias-add + ReLU on the VPU; intermediate
    # activations recast to bf16 for the next matmul; final store rounded to bf16.
    x = x_ref[...].astype(jnp.bfloat16)
    h1 = jnp.dot(x, w1_ref[...], preferred_element_type=jnp.float32)      # (TB, 128)
    h1 = jnp.maximum(h1 + b1_ref[...], 0.0).astype(jnp.bfloat16)
    h2 = jnp.dot(h1, w2_ref[...], preferred_element_type=jnp.float32)     # (TB, 128)
    h2 = jnp.maximum(h2 + b2_ref[...], 0.0).astype(jnp.bfloat16)
    o = jnp.dot(h2, w3_ref[...], preferred_element_type=jnp.float32)      # (TB, 128)
    o_ref[...] = (o + b3_ref[...]).astype(o_ref.dtype)


def _round_up(n, m):
    return ((n + m - 1) // m) * m


def _pick_tiling(B):
    """Pick (TB, grid).  TB is either the full batch (legal block == full dim) for
    tiny batches, or a multiple of 8 capped at MAX_TB and at ~B/2 so the grid keeps
    >= 2 steps (keeps both v7x TensorCores fed under 'parallel' semantics)."""
    if B <= 16:
        return B, 1                                  # single full-dim block
    tb = min(MAX_TB, _round_up((B + 1) // 2, 8))     # >= 2 grid steps
    grid = (B + tb - 1) // tb                        # ragged last block allowed
    return tb, grid


def prepare_params(params):
    """One-time (model-load) pad + cast of parameters to the kernel-resident layout.

    Weights -> lane-dense bf16; biases -> f32 (added on the f32 accumulator).
    Padded rows/columns are exact zeros so padded lanes stay exactly zero.
    """
    w1, b1, w2, b2, w3, b3 = params
    w1p = w1.astype(jnp.bfloat16)                                              # (784, 128)
    b1p = b1.astype(jnp.float32).reshape(1, H1)
    w2p = jnp.zeros((H1, H2_PAD), jnp.bfloat16).at[:, :H2].set(w2.astype(jnp.bfloat16))
    b2p = jnp.zeros((1, H2_PAD), jnp.float32).at[:, :H2].set(b2.reshape(1, H2))
    w3p = jnp.zeros((H2_PAD, N_PAD), jnp.bfloat16).at[:H2, :N_OUT].set(
        w3.astype(jnp.bfloat16))
    b3p = jnp.zeros((1, N_PAD), jnp.float32).at[:, :N_OUT].set(b3.reshape(1, N_OUT))
    return tuple(jax.device_put(p) for p in (w1p, b1p, w2p, b2p, w3p, b3p))


@jax.jit
def simple_nn_forward(x, prepared_params):
    """x: (B, 1, 28, 28) or (B, 784) float32; prepared_params from prepare_params().
    Returns logits (B, 10) float32."""
    w1p, b1p, w2p, b2p, w3p, b3p = prepared_params
    x2d = x.reshape(-1, K_IN).astype(jnp.float32)    # metadata-only reshape for NCHW f32
    B = x2d.shape[0]
    TB, grid = _pick_tiling(B)

    const = lambda i: (0, 0)   # weights/biases stay resident across grid steps

    weight_bytes = (K_IN * H1 + H1 * H2_PAD + H2_PAD * N_PAD) * 2 \
                   + (H1 + H2_PAD + N_PAD) * 4
    cost = pl.CostEstimate(
        flops=2 * B * (K_IN * H1 + H1 * H2_PAD + H2_PAD * N_PAD),
        transcendentals=0,
        bytes_accessed=B * K_IN * 4 + B * N_PAD * 2 + weight_bytes,
    )

    out = pl.pallas_call(
        _mlp_kernel,
        out_shape=jax.ShapeDtypeStruct((B, N_PAD), jnp.bfloat16),
        grid=(grid,),
        in_specs=[
            # x: tiled over batch; last block dim == full array dim (784), so no
            # 128-divisibility requirement; read f32 once, cast in-kernel.
            pl.BlockSpec((TB, K_IN), lambda i: (i, 0)),
            pl.BlockSpec((K_IN, H1), const),              # w1 (resident, bf16)
            pl.BlockSpec((1, H1), const),                 # b1 (resident, f32)
            pl.BlockSpec((H1, H2_PAD), const),            # w2 (resident, bf16)
            pl.BlockSpec((1, H2_PAD), const),             # b2 (resident, f32)
            pl.BlockSpec((H2_PAD, N_PAD), const),         # w3 (resident, bf16)
            pl.BlockSpec((1, N_PAD), const),              # b3 (resident, f32)
        ],
        out_specs=pl.BlockSpec((TB, N_PAD), lambda i: (i, 0)),
        compiler_params=pltpu.CompilerParams(
            dimension_semantics=("parallel",),            # v7x: shard batch over 2 TCs
            vmem_limit_bytes=40 * 1024 * 1024,            # raise v5e's 16 MiB default;
        ),                                                # < v7x's 64 MiB physical
        cost_estimate=cost,
    )(x2d, w1p, b1p, w2p, b2p, w3p, b3p)

    # Strip lane padding; return f32 logits to match the PyTorch interface.
    return out[:, :N_OUT].astype(jnp.float32)


def init_params(key):
    """Deterministic init mirroring nn.Linear default: U(-1/sqrt(fan_in), 1/sqrt(fan_in)).

    Weights are stored as (in_features, out_features); biases as (1, out_features).
    """
    dims = [(K_IN, 128), (128, 64), (64, 10)]
    params = []
    for (fan_in, fan_out) in dims:
        key, kw, kb = jax.random.split(key, 3)
        bound = 1.0 / math.sqrt(fan_in)
        w = jax.random.uniform(kw, (fan_in, fan_out), jnp.float32, -bound, bound)
        b = jax.random.uniform(kb, (1, fan_out), jnp.float32, -bound, bound)
        params += [w, b]
    return tuple(params)


def _reference_forward(x, params):
    """Plain-JAX f32 reference for correctness checking."""
    w1, b1, w2, b2, w3, b3 = params
    h = x.reshape(-1, K_IN).astype(jnp.float32)
    h = jnp.maximum(h @ w1 + b1, 0.0)
    h = jnp.maximum(h @ w2 + b2, 0.0)
    return h @ w3 + b3


if __name__ == "__main__":
    key = jax.random.PRNGKey(0)
    key, kx = jax.random.split(key)
    # Small MNIST-like batch, NCHW as in PyTorch.
    x = jax.random.normal(kx, (2, 1, 28, 28), jnp.float32)
    params = init_params(key)
    prepared = prepare_params(params)   # one-time weight pad/cast (model-load path)

    out = simple_nn_forward(x, prepared)
    out = jax.block_until_ready(out)

    ref = _reference_forward(x, params)
    assert out.shape == (2, 10)
    # Tolerance reflects bf16 matmul inputs and the bf16 logit store
    # (accumulation is f32 throughout).
    assert jnp.allclose(out, ref, atol=5e-2, rtol=5e-2)
    print("KERNEL_OK")
</pallas_src>

<mosaic_0001>
module attributes {stable_mosaic.version = 11 : i64} {
  func.func @_mlp_kernel(%arg0: i32, %arg1: memref<2x784xf32, #tpu.memory_space<vmem>>, %arg2: memref<784x128xbf16, #tpu.memory_space<vmem>>, %arg3: memref<1x128xf32, #tpu.memory_space<vmem>>, %arg4: memref<128x128xbf16, #tpu.memory_space<vmem>>, %arg5: memref<1x128xf32, #tpu.memory_space<vmem>>, %arg6: memref<128x128xbf16, #tpu.memory_space<vmem>>, %arg7: memref<1x128xf32, #tpu.memory_space<vmem>>, %arg8: memref<2x128xbf16, #tpu.memory_space<vmem>>) attributes {dimension_semantics = [#tpu.dimension_semantics<parallel>], iteration_bounds = array<i64: 1>, scalar_prefetch = 0 : i64, scratch_operands = 0 : i64, tpu.core_type = #tpu.core_type<tc>, window_params = [{transform_indices = @transform_0, window_bounds = array<i64: 2, 784>}, {pipeline_mode = #tpu.pipeline_mode<synchronous>, transform_indices = @transform_1, window_bounds = array<i64: 784, 128>}, {pipeline_mode = #tpu.pipeline_mode<synchronous>, transform_indices = @transform_2, window_bounds = array<i64: 1, 128>}, {pipeline_mode = #tpu.pipeline_mode<synchronous>, transform_indices = @transform_3, window_bounds = array<i64: 128, 128>}, {pipeline_mode = #tpu.pipeline_mode<synchronous>, transform_indices = @transform_4, window_bounds = array<i64: 1, 128>}, {pipeline_mode = #tpu.pipeline_mode<synchronous>, transform_indices = @transform_5, window_bounds = array<i64: 128, 128>}, {pipeline_mode = #tpu.pipeline_mode<synchronous>, transform_indices = @transform_6, window_bounds = array<i64: 1, 128>}, {transform_indices = @transform_7, window_bounds = array<i64: 2, 128>}]} {
    %c0 = arith.constant 0 : index
    %c0_0 = arith.constant 0 : index
    %0 = vector.load %arg1[%c0, %c0_0] : memref<2x784xf32, #tpu.memory_space<vmem>>, vector<2x784xf32>
    %1 = arith.truncf %0 : vector<2x784xf32> to vector<2x784xbf16>
    %c0_1 = arith.constant 0 : index
    %c0_2 = arith.constant 0 : index
    %2 = vector.load %arg2[%c0_1, %c0_2] : memref<784x128xbf16, #tpu.memory_space<vmem>>, vector<784x128xbf16>
    %cst = arith.constant dense<0.000000e+00> : vector<2x128xf32>
    %3 = tpu.matmul %1, %2, %cst {dimension_numbers = #tpu.dot_dimension_numbers<[1], [0], [0], [1], [0, 0, 1, 1], [], []>} : vector<2x784xbf16>, vector<784x128xbf16>, vector<2x128xf32> -> vector<2x128xf32>
    %c0_3 = arith.constant 0 : index
    %c0_4 = arith.constant 0 : index
    %4 = vector.load %arg3[%c0_3, %c0_4] : memref<1x128xf32, #tpu.memory_space<vmem>>, vector<1x128xf32>
    %5 = vector.broadcast %4 : vector<1x128xf32> to vector<2x128xf32>
    %6 = arith.addf %3, %5 : vector<2x128xf32>
    %cst_5 = arith.constant 0.000000e+00 : f32
    %7 = vector.broadcast %cst_5 : f32 to vector<2x128xf32>
    %8 = arith.maximumf %6, %7 : vector<2x128xf32>
    %9 = arith.truncf %8 : vector<2x128xf32> to vector<2x128xbf16>
    %c0_6 = arith.constant 0 : index
    %c0_7 = arith.constant 0 : index
    %10 = vector.load %arg4[%c0_6, %c0_7] : memref<128x128xbf16, #tpu.memory_space<vmem>>, vector<128x128xbf16>
    %cst_8 = arith.constant dense<0.000000e+00> : vector<2x128xf32>
    %11 = tpu.matmul %9, %10, %cst_8 {dimension_numbers = #tpu.dot_dimension_numbers<[1], [0], [0], [1], [0, 0, 1, 1], [], []>} : vector<2x128xbf16>, vector<128x128xbf16>, vector<2x128xf32> -> vector<2x128xf32>
    %c0_9 = arith.constant 0 : index
    %c0_10 = arith.constant 0 : index
    %12 = vector.load %arg5[%c0_9, %c0_10] : memref<1x128xf32, #tpu.memory_space<vmem>>, vector<1x128xf32>
    %13 = vector.broadcast %12 : vector<1x128xf32> to vector<2x128xf32>
    %14 = arith.addf %11, %13 : vector<2x128xf32>
    %cst_11 = arith.constant 0.000000e+00 : f32
    %15 = vector.broadcast %cst_11 : f32 to vector<2x128xf32>
    %16 = arith.maximumf %14, %15 : vector<2x128xf32>
    %17 = arith.truncf %16 : vector<2x128xf32> to vector<2x128xbf16>
    %c0_12 = arith.constant 0 : index
    %c0_13 = arith.constant 0 : index
    %18 = vector.load %arg6[%c0_12, %c0_13] : memref<128x128xbf16, #tpu.memory_space<vmem>>, vector<128x128xbf16>
    %cst_14 = arith.constant dense<0.000000e+00> : vector<2x128xf32>
    %19 = tpu.matmul %17, %18, %cst_14 {dimension_numbers = #tpu.dot_dimension_numbers<[1], [0], [0], [1], [0, 0, 1, 1], [], []>} : vector<2x128xbf16>, vector<128x128xbf16>, vector<2x128xf32> -> vector<2x128xf32>
    %c0_15 = arith.constant 0 : index
    %c0_16 = arith.constant 0 : index
    %20 = vector.load %arg7[%c0_15, %c0_16] : memref<1x128xf32, #tpu.memory_space<vmem>>, vector<1x128xf32>
    %21 = vector.broadcast %20 : vector<1x128xf32> to vector<2x128xf32>
    %22 = arith.addf %19, %21 : vector<2x128xf32>
    %23 = arith.truncf %22 : vector<2x128xf32> to vector<2x128xbf16>
    %c0_17 = arith.constant 0 : index
    %c0_18 = arith.constant 0 : index
    %24 = vector.load %arg8[%c0_17, %c0_18] : memref<2x128xbf16, #tpu.memory_space<vmem>>, vector<2x128xbf16>
    tpu.vector_store %arg8[%c0_17, %c0_18], %23 {strides = array<i32>} : memref<2x128xbf16, #tpu.memory_space<vmem>>, vector<2x128xbf16>,
    return
  }
  func.func @transform_0(%arg0: i32) -> (i32, i32) {
    %c0_i32 = arith.constant 0 : i32
    %c0_i32_0 = arith.constant 0 : i32
    return %arg0, %c0_i32 : i32, i32
  }
  func.func @transform_1(%arg0: i32) -> (i32, i32) {
    %c0_i32 = arith.constant 0 : i32
    %c0_i32_0 = arith.constant 0 : i32
    %c0_i32_1 = arith.constant 0 : i32
    return %c0_i32, %c0_i32_0 : i32, i32
  }
  func.func @transform_2(%arg0: i32) -> (i32, i32) {
    %c0_i32 = arith.constant 0 : i32
    %c0_i32_0 = arith.constant 0 : i32
    %c0_i32_1 = arith.constant 0 : i32
    return %c0_i32, %c0_i32_0 : i32, i32
  }
  func.func @transform_3(%arg0: i32) -> (i32, i32) {
    %c0_i32 = arith.constant 0 : i32
    %c0_i32_0 = arith.constant 0 : i32
    %c0_i32_1 = arith.constant 0 : i32
    return %c0_i32, %c0_i32_0 : i32, i32
  }
  func.func @transform_4(%arg0: i32) -> (i32, i32) {
    %c0_i32 = arith.constant 0 : i32
    %c0_i32_0 = arith.constant 0 : i32
    %c0_i32_1 = arith.constant 0 : i32
    return %c0_i32, %c0_i32_0 : i32, i32
  }
  func.func @transform_5(%arg0: i32) -> (i32, i32) {
    %c0_i32 = arith.constant 0 : i32
    %c0_i32_0 = arith.constant 0 : i32
    %c0_i32_1 = arith.constant 0 : i32
    return %c0_i32, %c0_i32_0 : i32, i32
  }
  func.func @transform_6(%arg0: i32) -> (i32, i32) {
    %c0_i32 = arith.constant 0 : i32
    %c0_i32_0 = arith.constant 0 : i32
    %c0_i32_1 = arith.constant 0 : i32
    return %c0_i32, %c0_i32_0 : i32, i32
  }
  func.func @transform_7(%arg0: i32) -> (i32, i32) {
    %c0_i32 = arith.constant 0 : i32
    %c0_i32_0 = arith.constant 0 : i32
    return %arg0, %c0_i32 : i32, i32
  }
}

</mosaic_0001>

<bundles_post_ra>
// kernel: simple_nn_forward.1
= control target key start
LH: loop header
LB: loop body
LE: loop exit
PB: predicated region body
PF: predicated region fallthrough
CT: control target
= control target key end

     0   :  { %12 = vsyncpa [#allocation3], 0  ;;  %s1093_s27 = smov [#allocation2]   ;;  %s1094_s29 = smov 64   ;;  %s1205_s0 = inlined_call_operand.vmem [shape: f32[2,784], index: 0, kind: input, shape index: {}]   ;;  %s1206_s1 = inlined_call_operand.hbm [shape: bf16[784,128], index: 1, kind: input, shape index: {}]   ;;  %s1207_s2 = inlined_call_operand.vmem [shape: f32[1,128], index: 2, kind: input, shape index: {}]   ;;  %s1208_s3 = inlined_call_operand.vmem [shape: bf16[128,128], index: 3, kind: input, shape index: {}]   ;;  %s1209_s4 = inlined_call_operand.vmem [shape: f32[1,128], index: 4, kind: input, shape index: {}]   ;;  %s1210_s5 = inlined_call_operand.vmem [shape: bf16[128,128], index: 5, kind: input, shape index: {}]   ;;  %s1211_s6 = inlined_call_operand.vmem [shape: f32[1,128], index: 6, kind: input, shape index: {}]   ;;  %s1212_s7 = inlined_call_operand.vmem [shape: bf16[2,128], index: 7, kind: output, shape index: {}]  }
   0x1   :  { %s19_s26 = sshll.u32 %s1206_s1, 4  ;;  %s21_s28 = sshll.u32 %s1093_s27, 4  ;;  %s20_s26 = int_to_ptr.hbm [resolvable:$true] %s19_s26  ;;  %s22_s28 = int_to_ptr.vmem [resolvable:$true] %s21_s28 }
   0x2   :  { %s1095_s30 = smov 4  }
   0x3   :  { %27 = dma.hbm_to_vmem [thread:$0]  %s20_s26, 6272, %s22_s28, [#allocation3], %s1094_s29, %s1094_s29, %s1095_s30  }
   0x4   :  { %1091 = dma.done.wait [#allocation3], 6272  }
   0x5   :  { %1092 = vsyncadd [#allocation3], 4294961024  ;;  %v1003_v0 = vld [vmem:[#allocation2 + $0x38] sm:$0xff]  ;;  %v1002_v3 = vld [vmem:[#allocation2 + $0x30] sm:$0xff]  ;;  %vm467_vm0 = vcmask 130048  }
   0x6   :  { %v1011_v1 = vld [vmem:[#allocation2 + $0x78] sm:$0xff]  ;;  %471 = vmatpush.bf16.msra.mxu0 %v1003_v0  ;;  %v1010_v4 = vld [vmem:[#allocation2 + $0x70] sm:$0xff]  ;;  %v1001_v8 = vld [vmem:[#allocation2 + $0x28] sm:$0xff] }
   0x7   :  { %v1019_v2 = vld [vmem:[#allocation2 + $0xb8] sm:$0xff]  ;;  %484 = vmatpush.bf16.msra.mxu1 %v1011_v1  ;;  %v1018_v5 = vld [vmem:[#allocation2 + $0xb0] sm:$0xff]  ;;  %v1009_v9 = vld [vmem:[#allocation2 + $0x68] sm:$0xff] }
   0x8   :  { %497 = vmatpush.bf16.msra.mxu2 %v1019_v2  ;;  %v1027_v6 = vld [vmem:[#allocation2 + $0xf8] sm:$0xff]  ;;  %v1026_v7 = vld [vmem:[#allocation2 + $0xf0] sm:$0xff]  ;;  %v1017_v10 = vld [vmem:[#allocation2 + $0xa8] sm:$0xff] }
   0x9   :  { %510 = vmatpush.bf16.msra.mxu3 %v1027_v6  ;;  %v1025_v11 = vld [vmem:[#allocation2 + $0xe8] sm:$0xff]  ;;  %v1000_v12 = vld [vmem:[#allocation2 + $0x20] sm:$0xff]  ;;  %v43_v15 = vld [vmem:[%s1205_s0] sm:$0xff] }
   0xa   :  { %472 = vmatpush.bf16.msra.mxu0 %v1002_v3  ;;  %v1008_v13 = vld [vmem:[#allocation2 + $0x60] sm:$0xff]  ;;  %47 = vst [vmem:[#allocation1] ss:$4 sm:$0xff] %v43_v15  ;;  %v999_v17 = vld [vmem:[#allocation2 + $0x18] sm:$0xff]  ;;  %v998_v22 = vld [vmem:[#allocation2 + $0x10] sm:$0xff] }
   0xb   :  { %485 = vmatpush.bf16.msra.mxu1 %v1010_v4  ;;  %v1016_v14 = vld [vmem:[#allocation2 + $0xa0] sm:$0xff]  ;;  %v1007_v18 = vld [vmem:[#allocation2 + $0x58] sm:$0xff]  ;;  %v1006_v23 = vld [vmem:[#allocation2 + $0x50] sm:$0xff] }
   0xc   :  { %498 = vmatpush.bf16.msra.mxu2 %v1018_v5  ;;  %v1024_v16 = vld [vmem:[#allocation2 + $0xe0] sm:$0xff]  ;;  %v1015_v20 = vld [vmem:[#allocation2 + $0x98] sm:$0xff]  ;;  %v1014_v24 = vld [vmem:[#allocation2 + $0x90] sm:$0xff] }
   0xd   :  { %511 = vmatpush.bf16.msra.mxu3 %v1026_v7  ;;  %v44_v19 = vld [vmem:[%s1205_s0 + $0x8] sm:$0x3f]  ;;  %v1023_v21 = vld [vmem:[#allocation2 + $0xd8] sm:$0xff]  ;;  %v1022_v25 = vld [vmem:[#allocation2 + $0xd0] sm:$0xff] }
   0xe   :  { %473 = vmatpush.bf16.msra.mxu0 %v1001_v8  ;;  %49 = vst [vmem:[#allocation1 + $0x20] ss:$4 sm:$0xff] %v44_v19  ;;  %v997_v26 = vld [vmem:[#allocation2 + $0x8] sm:$0xff]  ;;  %v996_v29 = vld [vmem:[#allocation2] sm:$0xff]  ;;  %v1035_v34 = vld [vmem:[#allocation2 + $0x138] sm:$0xff] }
   0xf   :  { %486 = vmatpush.bf16.msra.mxu1 %v1009_v9  ;;  %v1005_v27 = vld [vmem:[#allocation2 + $0x48] sm:$0xff]  ;;  %v1004_v30 = vld [vmem:[#allocation2 + $0x40] sm:$0xff]  ;;  %v1043_v35 = vld [vmem:[#allocation2 + $0x178] sm:$0xff] }
  0x10   :  { %499 = vmatpush.bf16.msra.mxu2 %v1017_v10  ;;  %v1013_v28 = vld [vmem:[#allocation2 + $0x88] sm:$0xff]  ;;  %v1012_v36 = vld [vmem:[#allocation2 + $0x80] sm:$0xff]  ;;  %v1034_v43 = vld [vmem:[#allocation2 + $0x130] sm:$0xff] }
  0x11   :  { %512 = vmatpush.bf16.msra.mxu3 %v1025_v11  ;;  %v1021_v31 = vld [vmem:[#allocation2 + $0xc8] sm:$0xff]  ;;  %v50_v32 = vld.sshfl [vmem:[#allocation1] sm:$0xff pattern:$0x73625140]  ;;  %v1020_v40 = vld [vmem:[#allocation2 + $0xc0] sm:$0xff] }
  0x12   :  { %474 = vmatpush.bf16.msra.mxu0 %v1000_v12  ;;  %v51_v33 = vld.sshfl [vmem:[#allocation1 + $0x8] sm:$0xff pattern:$0x73625140]  ;;  %v52_v37 = vld.sshfl [vmem:[#allocation1 + $0x10] sm:$0xff pattern:$0x73625140]  ;;  %v64_v38 = vpack.c.bf16 %v50_v32, %v50_v32 }
  0x13   :  { %487 = vmatpush.bf16.msra.mxu1 %v1008_v13  ;;  %v65_v39 = vpack.c.bf16 %v51_v33, %v51_v33  ;;  %v1044_v41 = vld [vmem:[#allocation2 + $0x180] sm:$0xff]  ;;  %v53_v42 = vld.sshfl [vmem:[#allocation1 + $0x18] sm:$0xff pattern:$0x73625140]  ;;  %v66_v45 = vpack.c.bf16 %v52_v37, %v52_v37  ;;  %v1033_v47 = vld [vmem:[#allocation2 + $0x128] sm:$0xff] }
  0x14   :  { %500 = vmatpush.bf16.msra.mxu2 %v1016_v14  ;;  %v1042_v44 = vld [vmem:[#allocation2 + $0x170] sm:$0xff]  ;;  %v67_v46 = vpack.c.bf16 %v53_v42, %v53_v42  ;;  %v1041_v48 = vld [vmem:[#allocation2 + $0x168] sm:$0xff]  ;;  %v1032_v49 = vld [vmem:[#allocation2 + $0x120] sm:$0xff] }
  0x15   :  { %513 = vmatpush.bf16.msra.mxu3 %v1024_v16  ;;  %v1040_v50 = vld [vmem:[#allocation2 + $0x160] sm:$0xff]  ;;  %v1031_v51 = vld [vmem:[#allocation2 + $0x118] sm:$0xff]  ;;  %v56_v53 = vld.sshfl [vmem:[#allocation1 + $0x30] sm:$0xff pattern:$0x73625140] }
  0x16   :  { %475 = vmatpush.bf16.msra.mxu0 %v999_v17  ;;  %v1039_v52 = vld [vmem:[#allocation2 + $0x158] sm:$0xff]  ;;  %v1030_v54 = vld [vmem:[#allocation2 + $0x110] sm:$0xff]  ;;  %v70_v56 = vpack.c.bf16 %v56_v53, %v56_v53  ;;  %v1029_v57 = vld [vmem:[#allocation2 + $0x108] sm:$0xff] }
  0x17   :  { %488 = vmatpush.bf16.msra.mxu1 %v1007_v18  ;;  %v1038_v55 = vld [vmem:[#allocation2 + $0x150] sm:$0xff]  ;;  %v1037_v58 = vld [vmem:[#allocation2 + $0x148] sm:$0xff]  ;;  %v1028_v59 = vld [vmem:[#allocation2 + $0x100] sm:$0xff] }
  0x18   :  { %501 = vmatpush.bf16.msra.mxu2 %v1015_v20  ;;  %v1036_v60 = vld [vmem:[#allocation2 + $0x140] sm:$0xff]  ;;  %v54_v61 = vld.sshfl [vmem:[#allocation1 + $0x20] sm:$0xff pattern:$0x73625140]  ;;  %v1052_v1 = vld [vmem:[%s1208_s3 + $0x38] sm:$0xff] }
  0x19   :  { %514 = vmatpush.bf16.msra.mxu3 %v1023_v21  ;;  %v55_v62 = vld.sshfl [vmem:[#allocation1 + $0x28] sm:$0xff pattern:$0x73625140]  ;;  %v68_v63 = vpack.c.bf16 %v54_v61, %v54_v61  ;;  %v1051_v2 = vld [vmem:[%s1208_s3 + $0x30] sm:$0xff]  ;;  %v1049_v4 = vld [vmem:[%s1208_s3 + $0x20] sm:$0xff] }
  0x1a   :  { %476 = vmatpush.bf16.msra.mxu0 %v998_v22  ;;  %v69_v0 = vpack.c.bf16 %v55_v62, %v55_v62  ;;  %v1050_v3 = vld [vmem:[%s1208_s3 + $0x28] sm:$0xff]  ;;  %v1048_v5 = vld [vmem:[%s1208_s3 + $0x18] sm:$0xff]  ;;  %v1047_v6 = vld [vmem:[%s1208_s3 + $0x10] sm:$0xff] }
  0x1b   :  { %489 = vmatpush.bf16.msra.mxu1 %v1006_v23  ;;  %v1046_v7 = vld [vmem:[%s1208_s3 + $0x8] sm:$0xff]  ;;  %v1045_v10 = vld [vmem:[%s1208_s3] sm:$0xff]  ;;  %v1060_v13 = vld [vmem:[%s1210_s5 + $0x38] sm:$0xff] }
  0x1c   :  { %502 = vmatpush.bf16.msra.mxu2 %v1014_v24  ;;  %v1059_v16 = vld [vmem:[%s1210_s5 + $0x30] sm:$0xff]  ;;  %v1064_v17 = vld [vmem:[%s1207_s2] ss:$0 sm:$0xff]  ;;  %v1058_v18 = vld [vmem:[%s1210_s5 + $0x28] sm:$0xff] }
  0x1d   :  { %515 = vmatpush.bf16.msra.mxu3 %v1022_v25  ;;  %v1057_v22 = vld [vmem:[%s1210_s5 + $0x20] sm:$0xff]  ;;  %v1056_v24 = vld [vmem:[%s1210_s5 + $0x18] sm:$0xff] }
  0x1e   :  { %477 = vmatpush.bf16.msra.mxu0 %v997_v26 }
  0x1f   :  { %490 = vmatpush.bf16.msra.mxu1 %v1005_v27  ;;  %v1055_v27 = vld [vmem:[%s1210_s5 + $0x10] sm:$0xff] }
  0x20   :  { %503 = vmatpush.bf16.msra.mxu2 %v1013_v28 }
  0x21   :  { %516 = vmatpush.bf16.msra.mxu3 %v1021_v31 }
  0x22   :  { %478 = vmatpush.bf16.msra.mxu0 %v996_v29 }
  0x23   :  { %491 = vmatpush.bf16.msra.mxu1 %v1004_v30 }
  0x24   :  { %504 = vmatpush.bf16.msra.mxu2 %v1012_v36 }
  0x25   :  { %479 = vmatmul.bf16.vlgmr.msra.gmra.mxu0 %v64_v38  ;;  %517 = vmatpush.bf16.msra.mxu3 %v1020_v40  ;;  %v1053_v40 = vld [vmem:[%s1210_s5] sm:$0xff] }
  0x26   :  { %523 = vmatpush.bf16.msrb.mxu0 %v1035_v34  ;;  %492 = vmatmul.bf16.vlgmr.msra.gmra.mxu1 %v65_v39  ;;  %v1054_v39 = vld [vmem:[%s1210_s5 + $0x8] sm:$0xff] }
  0x27   :  { %536 = vmatpush.bf16.msrb.mxu1 %v1043_v35  ;;  %505 = vmatmul.bf16.vlgmr.msra.gmra.mxu2 %v66_v45 }
  0x28   :  { %556 = vmatpush.bf16.msrb.mxu2 %v1044_v41  ;;  %518 = vmatmul.bf16.vlgmr.msra.gmra.mxu3 %v67_v46  ;;  %v1065_v41 = vld [vmem:[%s1209_s4] ss:$0 sm:$0xff] }
  0x29   :  { %632 = vmatpush.bf16.msrb.mxu3 %v1052_v1 }
  0x2a   :  { %524 = vmatpush.bf16.msrb.mxu0 %v1034_v43 }
  0x2b   :  { %537 = vmatpush.bf16.msrb.mxu1 %v1042_v44 }
  0x2c   :  { %715 = vmatpush.bf16.msra.mxu2 %v1060_v13 }
  0x2d   :  { %633 = vmatpush.bf16.msrb.mxu3 %v1051_v2 }
  0x2e   :  { %525 = vmatpush.bf16.msrb.mxu0 %v1033_v47  ;;  %v1066_v47 = vld [vmem:[%s1211_s6] ss:$0 sm:$0xff] }
  0x2f   :  { %538 = vmatpush.bf16.msrb.mxu1 %v1041_v48 }
  0x30   :  { %716 = vmatpush.bf16.msra.mxu2 %v1059_v16 }
  0x31   :  { %634 = vmatpush.bf16.msrb.mxu3 %v1050_v3 }
  0x32   :  { %526 = vmatpush.bf16.msrb.mxu0 %v1032_v49 }
  0x33   :  { %539 = vmatpush.bf16.msrb.mxu1 %v1040_v50 }
  0x34   :  { %717 = vmatpush.bf16.msra.mxu2 %v1058_v18 }
  0x35   :  { %635 = vmatpush.bf16.msrb.mxu3 %v1049_v4 }
  0x36   :  { %527 = vmatpush.bf16.msrb.mxu0 %v1031_v51 }
  0x37   :  { %540 = vmatpush.bf16.msrb.mxu1 %v1039_v52  ;;  %931 = vmatmul.msk.bf16.vlgmr.msrb.gmra.mxu2 %vm467_vm0, %v70_v56 }
  0x38   :  { %718 = vmatpush.bf16.msra.mxu2 %v1057_v22 }
  0x39   :  { %636 = vmatpush.bf16.msrb.mxu3 %v1048_v5 }
  0x3a   :  { %528 = vmatpush.bf16.msrb.mxu0 %v1030_v54 }
  0x3b   :  { %541 = vmatpush.bf16.msrb.mxu1 %v1038_v55 }
  0x3c   :  { %719 = vmatpush.bf16.msra.mxu2 %v1056_v24 }
  0x3d   :  { %637 = vmatpush.bf16.msrb.mxu3 %v1047_v6 }
  0x3e   :  { %529 = vmatpush.bf16.msrb.mxu0 %v1029_v57 }
  0x3f   :  { %542 = vmatpush.bf16.msrb.mxu1 %v1037_v58 }
  0x40   :  { %720 = vmatpush.bf16.msra.mxu2 %v1055_v27 }
  0x41   :  { %638 = vmatpush.bf16.msrb.mxu3 %v1046_v7 }
  0x42   :  { %530 = vmatpush.bf16.msrb.mxu0 %v1028_v59 }
  0x43   :  { %543 = vmatpush.bf16.msrb.mxu1 %v1036_v60 }
  0x44   :  { %721 = vmatpush.bf16.msra.mxu2 %v1054_v39 }
  0x45   :  { %531 = vmatmul.bf16.vlgmr.msrb.gmra.mxu0 %v68_v63  ;;  %639 = vmatpush.bf16.msrb.mxu3 %v1045_v10 }
  0x46   :  { %544 = vmatmul.bf16.vlgmr.msrb.gmra.mxu1 %v69_v0 }
  0x48   :  { %722 = vmatpush.bf16.msra.mxu2 %v1053_v40 }
  0xa2   :  { %v480_v8 = vpop.f32.mrf.mxu0 }
  0xa3   :  { %v493_v9 = vpop.f32.mrf.mxu1  ;;  %v481_v19 = vadd.f32 %v1064_v17, %v480_v8 }
  0xa5   :  { %v494_v23 = vadd.f32 %v493_v9, %v481_v19 }
  0xaa   :  { %v482_v11 = vpop.f32.mrf.mxu0  ;;  %v506_v14 = vpop.f32.mrf.mxu2 }
  0xab   :  { %v495_v12 = vpop.f32.mrf.mxu1  ;;  %v519_v15 = vpop.f32.mrf.mxu3  ;;  %v507_v25 = vadd.f32 %v506_v14, %v494_v23 }
  0xad   :  { %v520_v28 = vadd.f32 %v519_v15, %v507_v25 }
  0xb2   :  { %v508_v20 = vpop.f32.mrf.mxu2 }
  0xb3   :  { %v521_v21 = vpop.f32.mrf.mxu3 }
  0xba   :  { %v558_v26 = vpop.f32.mrf.mxu2 }
  0xc2   :  { %v532_v29 = vpop.f32.mrf.mxu0  ;;  %v560_v33 = vpop.f32.mrf.mxu2 }
  0xc3   :  { %v545_v30 = vpop.f32.mrf.mxu1  ;;  %v533_v31 = vadd.f32 %v532_v29, %v520_v28 }
  0xc5   :  { %v546_v32 = vadd.f32 %v545_v30, %v533_v31 }
  0xc7   :  { %v559_v34 = vadd.f32 %v558_v26, %v546_v32 }
  0xc9   :  { %v562_v35 = vmax.f32 %v559_v34, 0.0 }
  0xca   :  { %v534_v36 = vpop.f32.mrf.mxu0 }
  0xcb   :  { %v547_v37 = vpop.f32.mrf.mxu1  ;;  %v563_v38 = vpack.c.bf16 %v562_v35, %v562_v35 }
  0xcd   :  { %640 = vmatmul.bf16.vlgmr.msrb.gmra.mxu3 %v563_v38 }
 0x150   :  { %v641_v42 = vpop.f32.mrf.mxu3 }
 0x151   :  { %v642_v43 = vadd.f32 %v1065_v41, %v641_v42 }
 0x153   :  { %v645_v44 = vmax.f32 %v642_v43, 0.0 }
 0x155   :  { %v646_v45 = vpack.c.bf16 %v645_v44, %v645_v44 }
 0x157   :  { %723 = vmatmul.bf16.vlgmr.msra.gmra.mxu2 %v646_v45 }
 0x158   :  { %v643_v46 = vpop.f32.mrf.mxu3 }
 0x1da   :  { %v724_v48 = vpop.f32.mrf.mxu2 }
 0x1db   :  { %v725_v49 = vadd.f32 %v1066_v47, %v724_v48 }
 0x1dd   :  { %v728_v50 = vpack.c.bf16 %v725_v49, %v725_v49 }
 0x1df   :  { %729 = vst [vmem:[%s1212_s7] sm:$0x1] %v728_v50 }
 0x1e2   :  { %v726_v51 = vpop.f32.mrf.mxu2 }
 0x1e3   :  { %734 = vsyncpa [#allocation3], 1 }

</bundles_post_ra>
